<compile_context>
chip_gen: v7x
topology: tpu7x:2x2x1
jax: 0.10.0
libtpu: 0.0.40
codegen_flags: <defaults>
</compile_context>

<pallas_src>
import functools
import math

import jax
import jax.numpy as jnp
from jax import lax
from jax.experimental import pallas as pl
from jax.experimental.pallas import tpu as pltpu


def _round_up(x, m):
    return ((x + m - 1) // m) * m


def _attention_kernel(q_ref, k_ref, v_ref, o_ref, *scratch,
                      inv_sqrt_dk, mxu_dtype):
    # Block shapes:
    #   q_ref: (1, dk, tn)   k_ref: (1, dk, tm)   v_ref: (1, D, tn)
    #   o_ref: (1, D, tm)    scratch (optional): (D, tm) f32
    n = pl.program_id(2)
    n_last = pl.num_programs(2) - 1

    # Fold 1/sqrt(dk) into Q (dk*tn mults, not tn*tm), then hand the MXU
    # low-precision operands while accumulating in f32.
    qs = (q_ref[0].astype(jnp.float32) * inv_sqrt_dk).astype(mxu_dtype)
    ks = k_ref[0].astype(mxu_dtype)

    # x = Q^T @ K expressed as a dk-contraction (no explicit transpose).
    x = lax.dot_general(
        qs, ks,
        dimension_numbers=(((0,), (0,)), ((), ())),
        preferred_element_type=jnp.float32)            # (tn, tm) f32
    # Sigmoid on the EUP in f32 (safe on all generations), cast for the MXU.
    score = jax.nn.sigmoid(x).astype(mxu_dtype)        # (tn, tm)

    # This N-tile's contribution to V @ score, accumulated in f32.
    contrib = jnp.dot(v_ref[0].astype(mxu_dtype), score,
                      preferred_element_type=jnp.float32)   # (D, tm)

    if scratch:
        # Narrow output dtype: accumulate in a f32 VMEM scratch, cast once.
        acc_ref, = scratch

        @pl.when(n == 0)
        def _():
            acc_ref[...] = contrib

        @pl.when(n > 0)
        def _():
            acc_ref[...] += contrib

        @pl.when(n == n_last)
        def _():
            o_ref[0] = acc_ref[...].astype(o_ref.dtype)
    else:
        # f32 output: the output block is resident across the n axis, so
        # accumulate straight into it (saves D*tm*4 B of VMEM + final copy).
        @pl.when(n == 0)
        def _():
            o_ref[0] = contrib

        @pl.when(n > 0)
        def _():
            o_ref[0] += contrib


def _vmem_footprint(tm, tn, dk, D, in_bytes, out_bytes, use_scratch):
    """Rough per-step VMEM footprint (pipelined buffers + temps)."""
    qv_bufs = 3                                  # conservative (Buffered(3))
    q = dk * tn * in_bytes * qv_bufs
    k = dk * tm * in_bytes * 2
    v = D * tn * in_bytes * qv_bufs
    o = D * tm * out_bytes * 2
    acc = D * tm * 4 if use_scratch else 0
    tmp = tn * tm * 4 * 3                        # x (f32) + score + headroom
    return q + k + v + o + acc + tmp


def attention(Q, K, V, *, mxu_dtype=jnp.bfloat16,
              tm_cap=1024, tn_cap=512, vmem_budget_bytes=40 * 2**20):
    """Q: (B, dk, N), K: (B, dk, M), V: (B, D, N) -> (B, D, M).

    mxu_dtype: dtype fed to the MXU (default bf16; accumulation is always
    f32).  Pass None to keep the input dtype (bit-exact for f32 inputs).
    """
    B, dk, N = Q.shape
    Bk, dk2, M = K.shape
    Bv, D, Nv = V.shape
    assert B == Bk == Bv and dk == dk2 and N == Nv

    out_dtype = Q.dtype
    if mxu_dtype is None:
        mxu_dtype = Q.dtype
    inv_sqrt_dk = 1.0 / math.sqrt(dk)
    use_scratch = jnp.dtype(out_dtype) != jnp.dtype(jnp.float32)
    in_bytes = max(jnp.dtype(Q.dtype).itemsize, jnp.dtype(V.dtype).itemsize)
    out_bytes = jnp.dtype(out_dtype).itemsize

    # ---- tile selection (shape- and VMEM-budget-aware) ----------------------
    # Small dims become a single full-extent block (no padding, allowed by the
    # (8,128) rule's full-dim exception).  Large dims use 128-aligned tiles,
    # shrunk (tn first) until the pipelined footprint fits the budget.
    tm = M if M <= tm_cap else tm_cap
    tn = N if N <= tn_cap else tn_cap
    while (_vmem_footprint(tm, tn, dk, D, in_bytes, out_bytes, use_scratch)
           > vmem_budget_bytes):
        if tn > 128:
            tn = max(128, _round_up(tn // 2, 128))
        elif tm > 128:
            tm = max(128, _round_up(tm // 2, 128))
        else:
            break

    # Guarantee >= 2 parallel (B, M) tiles so v7x's second TensorCore has work
    # (only when it doesn't introduce padding).
    if B == 1 and M >= 256 and tm >= M and M % 256 == 0:
        tm = M // 2

    Mp = _round_up(M, tm)
    Np = _round_up(N, tn)

    # Padding only happens for ragged large dims (tile-divisible / full-extent
    # cases skip it entirely).  Zero-padding N keeps the sigmoid(0)=0.5 rows
    # of the padded score cancelled by zero V columns.
    if Mp != M:
        K = jnp.pad(K, ((0, 0), (0, 0), (0, Mp - M)))
    if Np != N:
        Q = jnp.pad(Q, ((0, 0), (0, 0), (0, Np - N)))
        V = jnp.pad(V, ((0, 0), (0, 0), (0, Np - N)))

    n_steps = Np // tn
    grid = (B, Mp // tm, n_steps)

    # 3-deep buffering on the streamed inputs (Q, V) when the reduction is
    # long enough to benefit; K's block index is invariant over n.
    qv_bufs = 3 if n_steps >= 3 else 2

    def _spec(shape, index_map, bufs=2):
        if bufs != 2:
            return pl.BlockSpec(shape, index_map,
                                pipeline_mode=pl.Buffered(bufs))
        return pl.BlockSpec(shape, index_map)

    in_specs = [
        _spec((1, dk, tn), lambda b, m, n: (b, 0, n), qv_bufs),   # Q
        _spec((1, dk, tm), lambda b, m, n: (b, 0, m)),            # K
        _spec((1, D, tn), lambda b, m, n: (b, 0, n), qv_bufs),    # V
    ]
    out_spec = pl.BlockSpec((1, D, tm), lambda b, m, n: (b, 0, m))

    scratch_shapes = [pltpu.VMEM((D, tm), jnp.float32)] if use_scratch else []

    footprint = _vmem_footprint(tm, tn, dk, D, in_bytes, out_bytes, use_scratch)
    # Explicit scoped-VMEM limit: >= footprint with margin, never below the
    # common default, capped so it stays inside v7x's 64 MiB physical VMEM.
    vmem_limit_bytes = int(min(max(32 * 2**20, footprint * 3 // 2), 56 * 2**20))

    # TODO(synk): for tiny dk/D (<~64) with large B, pack several heads per
    # grid step (B block > 1 + unrolled fori_loop) to raise MXU fill.

    kernel = functools.partial(_attention_kernel,
                               inv_sqrt_dk=inv_sqrt_dk, mxu_dtype=mxu_dtype)

    out = pl.pallas_call(
        kernel,
        out_shape=jax.ShapeDtypeStruct((B, D, Mp), out_dtype),
        grid_spec=pltpu.PrefetchScalarGridSpec(
            num_scalar_prefetch=0,
            grid=grid,
            in_specs=in_specs,
            out_specs=out_spec,
            scratch_shapes=scratch_shapes,
        ),
        compiler_params=pltpu.CompilerParams(
            dimension_semantics=("parallel", "parallel", "arbitrary"),
            vmem_limit_bytes=vmem_limit_bytes),
    )(Q, K, V)

    if Mp != M:
        out = out[:, :, :M]
    return out


def attention_ref(Q, K, V):
    dk = Q.shape[1]
    x = jnp.matmul(jnp.transpose(Q, (0, 2, 1)), K) / math.sqrt(dk)
    score = jax.nn.sigmoid(x)
    return jnp.matmul(V, score)


if __name__ == "__main__":
    key = jax.random.PRNGKey(0)
    kq, kk, kv = jax.random.split(key, 3)

    B, dk, N, M, D = 2, 8, 16, 16, 8
    Q = jax.random.normal(kq, (B, dk, N), dtype=jnp.float32)
    K = jax.random.normal(kk, (B, dk, M), dtype=jnp.float32)
    V = jax.random.normal(kv, (B, D, N), dtype=jnp.float32)

    ref = attention_ref(Q, K, V)

    # Default path: f32 inputs, bf16 MXU operands, f32 accumulation.
    # bf16 operands relax the tolerance (documented in the review).
    out = jax.block_until_ready(attention(Q, K, V))
    assert out.shape == (B, D, M), out.shape
    err = float(jnp.max(jnp.abs(out - ref)))
    assert err < 1e-1, err

    # Exact path (mxu_dtype=None keeps everything in f32) matches tightly.
    out_exact = jax.block_until_ready(attention(Q, K, V, mxu_dtype=None))
    assert jnp.allclose(out_exact, ref, atol=1e-4, rtol=1e-4), float(
        jnp.max(jnp.abs(out_exact - ref)))

    # bf16 inputs/outputs exercise the scratch-accumulator path.
    Qb, Kb, Vb = (x.astype(jnp.bfloat16) for x in (Q, K, V))
    out_bf16 = jax.block_until_ready(attention(Qb, Kb, Vb))
    assert out_bf16.dtype == jnp.bfloat16
    err_bf16 = float(jnp.max(jnp.abs(out_bf16.astype(jnp.float32) - ref)))
    assert err_bf16 < 2e-1, err_bf16

    print("KERNEL_OK")
</pallas_src>

<mosaic_0001>
module attributes {stable_mosaic.version = 11 : i64} {
  func.func @_attention_kernel(%arg0: i32, %arg1: i32, %arg2: i32, %arg3: memref<1x8x16xf32, #tpu.memory_space<vmem>>, %arg4: memref<1x8x16xf32, #tpu.memory_space<vmem>>, %arg5: memref<1x8x16xf32, #tpu.memory_space<vmem>>, %arg6: memref<1x8x16xf32, #tpu.memory_space<vmem>>) attributes {dimension_semantics = [#tpu.dimension_semantics<parallel>, #tpu.dimension_semantics<parallel>, #tpu.dimension_semantics<arbitrary>], iteration_bounds = array<i64: 2, 1, 1>, scalar_prefetch = 0 : i64, scratch_operands = 0 : i64, tpu.core_type = #tpu.core_type<tc>, window_params = [{transform_indices = @transform_0, window_bounds = array<i64: 1, 8, 16>}, {transform_indices = @transform_1, window_bounds = array<i64: 1, 8, 16>}, {transform_indices = @transform_2, window_bounds = array<i64: 1, 8, 16>}, {transform_indices = @transform_3, window_bounds = array<i64: 1, 8, 16>}]} {
    %c0 = arith.constant 0 : index
    %c0_0 = arith.constant 0 : index
    %c0_1 = arith.constant 0 : index
    %0 = vector.load %arg3[%c0, %c0_0, %c0_1] : memref<1x8x16xf32, #tpu.memory_space<vmem>>, vector<1x8x16xf32>
    %1 = vector.shape_cast %0 : vector<1x8x16xf32> to vector<8x16xf32>
    %cst = arith.constant 0.353553385 : f32
    %2 = vector.broadcast %cst : f32 to vector<8x16xf32>
    %3 = arith.mulf %1, %2 : vector<8x16xf32>
    %4 = arith.truncf %3 : vector<8x16xf32> to vector<8x16xbf16>
    %c0_2 = arith.constant 0 : index
    %c0_3 = arith.constant 0 : index
    %c0_4 = arith.constant 0 : index
    %5 = vector.load %arg4[%c0_2, %c0_3, %c0_4] : memref<1x8x16xf32, #tpu.memory_space<vmem>>, vector<1x8x16xf32>
    %6 = vector.shape_cast %5 : vector<1x8x16xf32> to vector<8x16xf32>
    %7 = arith.truncf %6 : vector<8x16xf32> to vector<8x16xbf16>
    %cst_5 = arith.constant dense<0.000000e+00> : vector<16x16xf32>
    %8 = tpu.matmul %4, %7, %cst_5 {dimension_numbers = #tpu.dot_dimension_numbers<[0], [0], [1], [1], [0, 1, 1, 1], [], []>} : vector<8x16xbf16>, vector<8x16xbf16>, vector<16x16xf32> -> vector<16x16xf32>
    %9 = arith.negf %8 : vector<16x16xf32>
    %10 = math.exp %9 : vector<16x16xf32>
    %cst_6 = arith.constant 1.000000e+00 : f32
    %11 = vector.broadcast %cst_6 : f32 to vector<16x16xf32>
    %12 = arith.addf %11, %10 : vector<16x16xf32>
    %13 = arith.divf %11, %12 : vector<16x16xf32>
    %14 = arith.truncf %13 : vector<16x16xf32> to vector<16x16xbf16>
    %c0_7 = arith.constant 0 : index
    %c0_8 = arith.constant 0 : index
    %c0_9 = arith.constant 0 : index
    %15 = vector.load %arg5[%c0_7, %c0_8, %c0_9] : memref<1x8x16xf32, #tpu.memory_space<vmem>>, vector<1x8x16xf32>
    %16 = vector.shape_cast %15 : vector<1x8x16xf32> to vector<8x16xf32>
    %17 = arith.truncf %16 : vector<8x16xf32> to vector<8x16xbf16>
    %cst_10 = arith.constant dense<0.000000e+00> : vector<8x16xf32>
    %18 = tpu.matmul %17, %14, %cst_10 {dimension_numbers = #tpu.dot_dimension_numbers<[1], [0], [0], [1], [0, 0, 1, 1], [], []>} : vector<8x16xbf16>, vector<16x16xbf16>, vector<8x16xf32> -> vector<8x16xf32>
    %c0_i32 = arith.constant 0 : i32
    %19 = arith.cmpi eq, %arg2, %c0_i32 : i32
    %20 = arith.extui %19 : i1 to i32
    %c0_i32_11 = arith.constant 0 : i32
    %21 = arith.cmpi ne, %20, %c0_i32_11 : i32
    scf.if %21 {
      %c0_14 = arith.constant 0 : index
      %c0_15 = arith.constant 0 : index
      %c0_16 = arith.constant 0 : index
      %25 = vector.load %arg6[%c0_14, %c0_15, %c0_16] : memref<1x8x16xf32, #tpu.memory_space<vmem>>, vector<1x8x16xf32>
      %26 = vector.shape_cast %25 : vector<1x8x16xf32> to vector<8x16xf32>
      %27 = vector.shape_cast %18 : vector<8x16xf32> to vector<1x8x16xf32>
      tpu.vector_store %arg6[%c0_14, %c0_15, %c0_16], %27 {strides = array<i32>} : memref<1x8x16xf32, #tpu.memory_space<vmem>>, vector<1x8x16xf32>,
    } else {
    }
    %c0_i32_12 = arith.constant 0 : i32
    %22 = arith.cmpi sgt, %arg2, %c0_i32_12 : i32
    %23 = arith.extui %22 : i1 to i32
    %c0_i32_13 = arith.constant 0 : i32
    %24 = arith.cmpi ne, %23, %c0_i32_13 : i32
    scf.if %24 {
      %c0_14 = arith.constant 0 : index
      %c0_15 = arith.constant 0 : index
      %c0_16 = arith.constant 0 : index
      %25 = vector.load %arg6[%c0_14, %c0_15, %c0_16] : memref<1x8x16xf32, #tpu.memory_space<vmem>>, vector<1x8x16xf32>
      %26 = vector.shape_cast %25 : vector<1x8x16xf32> to vector<8x16xf32>
      %27 = arith.addf %26, %18 : vector<8x16xf32>
      %c0_17 = arith.constant 0 : index
      %c0_18 = arith.constant 0 : index
      %c0_19 = arith.constant 0 : index
      %28 = vector.load %arg6[%c0_17, %c0_18, %c0_19] : memref<1x8x16xf32, #tpu.memory_space<vmem>>, vector<1x8x16xf32>
      %29 = vector.shape_cast %28 : vector<1x8x16xf32> to vector<8x16xf32>
      %30 = vector.shape_cast %27 : vector<8x16xf32> to vector<1x8x16xf32>
      tpu.vector_store %arg6[%c0_17, %c0_18, %c0_19], %30 {strides = array<i32>} : memref<1x8x16xf32, #tpu.memory_space<vmem>>, vector<1x8x16xf32>,
    } else {
    }
    return
  }
  func.func @transform_0(%arg0: i32, %arg1: i32, %arg2: i32) -> (i32, i32, i32) {
    %c0_i32 = arith.constant 0 : i32
    %c0_i32_0 = arith.constant 0 : i32
    return %arg0, %c0_i32, %arg2 : i32, i32, i32
  }
  func.func @transform_1(%arg0: i32, %arg1: i32, %arg2: i32) -> (i32, i32, i32) {
    %c0_i32 = arith.constant 0 : i32
    %c0_i32_0 = arith.constant 0 : i32
    return %arg0, %c0_i32, %arg1 : i32, i32, i32
  }
  func.func @transform_2(%arg0: i32, %arg1: i32, %arg2: i32) -> (i32, i32, i32) {
    %c0_i32 = arith.constant 0 : i32
    %c0_i32_0 = arith.constant 0 : i32
    return %arg0, %c0_i32, %arg2 : i32, i32, i32
  }
  func.func @transform_3(%arg0: i32, %arg1: i32, %arg2: i32) -> (i32, i32, i32) {
    %c0_i32 = arith.constant 0 : i32
    %c0_i32_0 = arith.constant 0 : i32
    return %arg0, %c0_i32, %arg1 : i32, i32, i32
  }
}

</mosaic_0001>

<bundles_post_ra>
// kernel: tpu_custom_call.1
= control target key start
LH: loop header
LB: loop body
LE: loop exit
PB: predicated region body
PF: predicated region fallthrough
CT: control target
= control target key end

     0   :  { %s1162_s0 = inlined_call_operand.hbm [shape: f32[2,8,16], index: 0, kind: input, shape index: {}]   ;;  %s1163_s1 = inlined_call_operand.hbm [shape: f32[2,8,16], index: 1, kind: input, shape index: {}]   ;;  %s1164_s2 = inlined_call_operand.hbm [shape: f32[2,8,16], index: 2, kind: input, shape index: {}]   ;;  %s1165_s3 = inlined_call_operand.hbm [shape: f32[2,8,16], index: 3, kind: output, shape index: {}]  }
   0x1   :  { %1171 = sst [smem:[#allocation15_spill]] %s1163_s1 }
   0x2   :  { %8 = vsyncpa [#allocation3], 0 }
   0x3   :  { %10 = vsyncpa [#allocation3 + $0x1], 0 }
   0x4   :  { %11 = vsyncpa [#allocation6], 0 }
   0x5   :  { %13 = vsyncpa [#allocation6 + $0x1], 0 }
   0x6   :  { %14 = vsyncpa [#allocation4], 0 }
   0x7   :  { %16 = vsyncpa [#allocation4 + $0x1], 0  ;;  %s898_s12 = smov 0   ;;  %s900_s13 = smov 0  }
   0x8   :  { %s902_s14 = smov 0   ;;  %s904_s15 = smov 0  }
   0x9   :  { %s906_s16 = smov 0   ;;  %s908_s17 = smov 0  }
   0xa LB: > { %1172 = sst [smem:[#allocation12_spill]] %s866_s16  ;;  %s929_s18 = sadd.s32 4294967295, %s870_s17   ;;  %s870_s17 = sphi %s908_s17, %s22_s17   ;;  %s866_s16 = sphi %s906_s16, %s1193_s16   ;;  %s862_s15 = sphi %s904_s15, %s1192_s15   ;;  %s858_s14 = sphi %s902_s14, %s1196_s14   ;;  %s854_s13 = sphi %s900_s13, %s1195_s13   ;;  %s850_s12 = sphi %s898_s12, %s1194_s12  }
   0xb   : > { %s573_s19 = sadd.s32 4294967294, %s870_s17   ;;  %s41_s20 = sadd.s32 1, %s866_s16 }
   0xc   : > { %s50_s21 = sadd.s32 1, %s858_s14  ;;  %p43_p0 = scmp.ge.s32.totalorder %s41_s20, 2 }
   0xd   : > { %p57_p1 = scmp.ne.s32.totalorder %s858_s14, %s854_s13  ;;  %p58_p2 = scmp.eq.s32.totalorder %s870_s17, 0 }
   0xe   : > { %p63_p3 = scmp.ne.s32.totalorder %s854_s13, %s850_s12  ;;  %s1198_s20 = smov (%p43_p0, %s41_s20), 0 }
   0xf   : > { %1173 = sst [smem:[#allocation13_spill]] %s1198_s20  ;;  %p941_p4 = por %p58_p2, %p57_p1 }
  0x10   : > { %p64_p5 = scmp.eq.s32.totalorder %s929_s18, 0  ;;  %s45_s23 = ssub.s32 %s866_s16, %s1198_s20 }
  0x11   : > { %p145_p6 = scmp.eq.s32.totalorder %s929_s18, 1  ;;  %p48_p7 = scmp.eq.s32.totalorder %s45_s23, 0 }
  0x12   : > { %p949_p8 = por %p64_p5, %p63_p3  ;;  %p151_p10 = scmp.eq.s32.totalorder %s573_s19, 1 }
  0x13   : > { %p953_p9 = por %p145_p6, %p57_p1  ;;  %p633_p13 = scmp.lt.s32.totalorder %s870_s17, 2 }
  0x14   : > { %s1175_s24 = scalar_select %p949_p8, 1, 0 }
  0x15   : > { %s1176_s25 = scalar_select %p953_p9, 1, 0 }
  0x16   : > { %s958_s26 = scalar_select %p48_p7, %s858_s14, %s50_s21  }
  0x17   : > { %p960_p11 = por %p151_p10, %p63_p3  ;;  %s171_s28 = sand.u32 1, %s858_s14  }
  0x18   : > { %1177 = sst [smem:[#allocation14_spill]] %s958_s26  ;;  %s969_s29 = sshll.u32 %s171_s28, 3 }
  0x19   : > { %s1178_s27 = scalar_select %p960_p11, 1, 0 }
  0x1a   : > { %s972_s30 = sshll.u32 %s866_s16, 7  ;;  %p976_p0 = pnand %p633_p13, %p941_p4 }
  0x1b   : > { %s190_s5 = sand.u32 1, %s870_s17   ;;  %s1180_s1 = sld [smem:[#allocation15_spill]] }
  0x1c   : > { %s1179_s4 = scalar_select %p976_p0, 1, 0 }
  0x1d   : > { %s194_s9 = scalar_lea.vmem [#allocation5], %s969_s29  ;;  %s992_s11 = scalar_lea.sflag [#allocation6], %s190_s5 }
  0x1e   : > { %s202_s10 = sshll.u32 %s194_s9, 4  ;;  %p998_p4 = pneg %p976_p0  ;;  %s989_s10 = int_to_ptr.vmem [resolvable:$true] %s202_s10 }
  0x21   : > { %s985_s8 = scalar_lea.hbm %s1180_s1, %s972_s30  ;;  %s699_s6 = scalar_lea.hbm %s1180_s1, 256 }
  0x22   : > { %s694_s19 = scalar_lea.hbm %s985_s8, 128  ;;  %p700_p7 = scmp.lt.u32.totalorder %s985_s8, %s1180_s1 }
  0x23   : > { %p695_p3 = scmp.ne.s32.totalorder %s985_s8, %s694_s19  ;;  %p701_p10 = scmp.lt.u32.totalorder %s699_s6, %s694_s19 }
  0x24   : > { %p703_p12 = scmp.lt.u32.totalorder %s694_s19, %s985_s8 }
  0x25   : > { %p697_p5 = pnand %p998_p4, %p695_p3  ;;  %p702_p13 = por %p701_p10, %p700_p7 }
  0x27   : > { %p698_p6 = pneg %p697_p5  ;;  %p704_p1 = por %p703_p12, %p702_p13 }
  0x29   : > { %p705_p2 = pnand %p704_p1, %p698_p6 }
  0x2b   : > { %708 = shalt.err (!%p705_p2)
}
  0x2c   : > { %s709_s5 = scalar_lea.vmem %s989_s10, 128  ;;  %s872_s22 = smov [#allocation5]  }
  0x2d   : > { %p710_p3 = scmp.ne.s32.totalorder %s989_s10, %s709_s5  ;;  %s714_s23 = sshll.u32 %s872_s22, 4  ;;  %s715_s23 = int_to_ptr.vmem [resolvable:$false] %s714_s23 }
  0x2e   : > { %s716_s7 = scalar_lea.vmem %s715_s23, 256  ;;  %p717_p9 = scmp.lt.s32.totalorder %s989_s10, %s715_s23 }
  0x2f   : > { %p712_p5 = pnand %p710_p3, %p998_p4  ;;  %p718_p8 = scmp.lt.s32.totalorder %s716_s7, %s709_s5 }
  0x31   : > { %p713_p11 = pneg %p712_p5  ;;  %p719_p7 = por %p718_p8, %p717_p9 }
  0x33   : > { %p720_p10 = pnand %p719_p7, %p713_p11 }
  0x35   : > { %723 = shalt.err (!%p720_p10)
}
  0x36   : > { %625 = dma.hbm_to_vmem [thread:$0]  (!%p976_p0), %s985_s8, 128, %s989_s10, %s992_s11  }
  0x37   : > { %p1182_p12 = scmp.lt.s32.totalorder %s870_s17, 3  ;;  %p1183_p1 = scmp.ge.s32.totalorder %s870_s17, 1 }
  0x38   : > { %s1034_s5 = scalar_lea.hbm %s1162_s0, %s972_s30  ;;  %s175_s22 = scalar_lea.vmem [#allocation2], %s969_s29 }
  0x39   : > { %p1026_p2 = pnand %p1183_p1, %p1182_p12  ;;  %s183_s23 = sshll.u32 %s175_s22, 4  ;;  %s1037_s23 = int_to_ptr.vmem [resolvable:$true] %s183_s23 }
  0x3a   : > { %s1043_s7 = scalar_lea.hbm %s1164_s2, %s972_s30  ;;  %s172_s1 = scalar_lea.sflag [#allocation3], %s171_s28 }
  0x3b   : > { %s1184_s19 = scalar_select %p1026_p2, 1, 0 }
  0x3c   : > { %s724_s20 = scalar_lea.hbm %s1034_s5, 128  ;;  %s729_s16 = scalar_lea.hbm %s1162_s0, 256 }
  0x3d   : > { %p725_p8 = scmp.ne.s32.totalorder %s1034_s5, %s724_s20  ;;  %p730_p6 = scmp.lt.u32.totalorder %s1034_s5, %s1162_s0 }
  0x3e   : > { %p731_p13 = scmp.lt.u32.totalorder %s729_s16, %s724_s20  ;;  %p733_p5 = scmp.lt.u32.totalorder %s724_s20, %s1034_s5 }
  0x3f   : > { %p727_p9 = pnand %p725_p8, %p998_p4 }
  0x40   : > { %p732_p3 = por %p731_p13, %p730_p6 }
  0x41   : > { %p728_p11 = pneg %p727_p9 }
  0x42   : > { %p734_p7 = por %p733_p5, %p732_p3 }
  0x44   : > { %p735_p10 = pnand %p734_p7, %p728_p11 }
  0x46   : > { %738 = shalt.err (!%p735_p10)
}
  0x47   : > { %s739_s28 = scalar_lea.vmem %s1037_s23, 128  ;;  %s873_s30 = smov [#allocation2]  }
  0x48   : > { %p740_p12 = scmp.ne.s32.totalorder %s1037_s23, %s739_s28  ;;  %s744_s8 = sshll.u32 %s873_s30, 4  ;;  %s745_s8 = int_to_ptr.vmem [resolvable:$false] %s744_s8 }
  0x49   : > { %s746_s26 = scalar_lea.vmem %s745_s8, 256  ;;  %p747_p9 = scmp.lt.s32.totalorder %s1037_s23, %s745_s8 }
  0x4a   : > { %p742_p1 = pnand %p740_p12, %p998_p4  ;;  %p748_p2 = scmp.lt.s32.totalorder %s746_s26, %s739_s28 }
  0x4c   : > { %p743_p8 = pneg %p742_p1  ;;  %p749_p6 = por %p748_p2, %p747_p9 }
  0x4e   : > { %p750_p13 = pnand %p749_p6, %p743_p8 }
  0x50   : > { %753 = shalt.err (!%p750_p13)
}
  0x51   : > { %622 = dma.hbm_to_vmem [thread:$0]  (!%p976_p0), %s1034_s5, 128, %s1037_s23, %s172_s1  }
  0x52   : > { %s213_s16 = scalar_lea.vmem [#allocation7], %s969_s29  ;;  %s754_s10 = scalar_lea.hbm %s1043_s7, 128 }
  0x53   : > { %s221_s20 = sshll.u32 %s213_s16, 4  ;;  %p755_p11 = scmp.ne.s32.totalorder %s1043_s7, %s754_s10  ;;  %s222_s20 = int_to_ptr.vmem [resolvable:$true] %s221_s20 }
  0x54   : > { %s759_s22 = scalar_lea.hbm %s1164_s2, 256  ;;  %p760_p5 = scmp.lt.u32.totalorder %s1043_s7, %s1164_s2 }
  0x55   : > { %p757_p2 = pnand %p755_p11, %p998_p4  ;;  %p761_p7 = scmp.lt.u32.totalorder %s759_s22, %s754_s10 }
  0x56   : > { %p763_p12 = scmp.lt.u32.totalorder %s754_s10, %s1043_s7 }
  0x57   : > { %p758_p3 = pneg %p757_p2  ;;  %p762_p10 = por %p761_p7, %p760_p5 }
  0x59   : > { %p764_p1 = por %p763_p12, %p762_p10 }
  0x5b   : > { %p765_p8 = pnand %p764_p1, %p758_p3 }
  0x5d   : > { %768 = shalt.err (!%p765_p8)
}
  0x5e   : > { %s769_s1 = scalar_lea.vmem %s222_s20, 128  ;;  %s874_s29 = smov [#allocation7]  }
  0x5f   : > { %p770_p9 = scmp.ne.s32.totalorder %s222_s20, %s769_s1  ;;  %s774_s5 = sshll.u32 %s874_s29, 4  ;;  %s775_s5 = int_to_ptr.vmem [resolvable:$false] %s774_s5 }
  0x60   : > { %s776_s23 = scalar_lea.vmem %s775_s5, 256  ;;  %p777_p11 = scmp.lt.s32.totalorder %s222_s20, %s775_s5 }
  0x61   : > { %p772_p6 = pnand %p770_p9, %p998_p4  ;;  %p778_p2 = scmp.lt.s32.totalorder %s776_s23, %s769_s1 }
  0x63   : > { %p773_p13 = pneg %p772_p6  ;;  %p779_p0 = por %p778_p2, %p777_p11 }
  0x65   : > { %p780_p5 = pnand %p779_p0, %p773_p13 }
  0x67   : > { %783 = shalt.err (!%p780_p5)
}
  0x68   : > { %p1185_p7 = scmp.ne.s32.totalorder %s1179_s4, 0  ;;  %p1186_p3 = scmp.ne.s32.totalorder %s1184_s19, 0 }
  0x69   : > { %s1090_s21 = sand.u32 (!%p1186_p3), 1, %s854_s13   ;;  %p1187_p0 = scmp.ne.s32.totalorder (!%p1186_p3), %s1175_s24, 0 }
  0x6a   : > { %628 = dma.hbm_to_vmem [thread:$0]  (!%p1185_p7), %s1043_s7, 128, %s222_s20, %s992_s11  }
  0x6b   : > { %230 = sbr.rel (%p1186_p3) target bundleno = 698 (0x2ba), region = 32  ;;  %s1093_s8 = sshll.u32 (!%p1186_p3), %s1090_s21, 3 }
  0x6c   : > { %s233_s26 = scalar_lea.sflag (!%p1186_p3), [#allocation3], %s1090_s21  ;;  %s236_s16 = scalar_lea.vmem (!%p1186_p3), [#allocation2], %s1093_s8 }
  0x72   : > { %837 = dma.done.wait (%p1187_p0), %s233_s26, 128  }
  0x73   : > { %839 = vsyncadd (%p1187_p0), %s233_s26, 4294967168  ;;  %s241_s4 = sand.u32 1, %s929_s18   ;;  %s245_s19 = scalar_lea.vmem [#allocation5], %s1093_s8 }
  0x74   : > { %s242_s11 = scalar_lea.sflag [#allocation6], %s241_s4 }
  0x75   : > { %841 = dma.done.wait (%p1187_p0), %s242_s11, 256  }
  0x76   : > { %843 = vsyncadd (%p1187_p0), %s242_s11, 4294967040  ;;  %v875_v0 = vmov 0.0   ;;  %vm876_vm0 = vmmov 0   ;;  %v288_v1 = vld [vmem:[%s236_s16] sm:$0xff]  ;;  %v291_v2 = vld [vmem:[%s245_s19] sm:$0xff]  ;;  %vm313_vm1 = vcmask 1043456  }
  0x77   : > { %599 = vmatprep.subr.bf16.mxu0 %v875_v0  ;;  %601 = vmatprep.mubr.msk.bf16.mxu0 %vm876_vm0, %v875_v0  ;;  %v289_v3 = vmul.f32 0.35355338, %v288_v1  ;;  %v292_v4 = vpack.c.bf16 %v291_v2, %v291_v2  ;;  %vm309_vm2 = vcmask 64512   ;;  %s254_s18 = scalar_lea.vmem [#allocation7], %s1093_s8  ;;  %vm373_vm3 = vcmask 130048   ;;  %s592_s24 = sshll.u32 %s862_s15, 7 }
  0x78   : > { %605 = vmatprep.subr.bf16.mxu1 %v875_v0  ;;  %607 = vmatprep.mubr.msk.bf16.mxu1 %vm876_vm0, %v875_v0  ;;  %v371_v19 = vld [vmem:[%s254_s18] sm:$0xff]  ;;  %s286_s7 = scalar_lea.vmem [#allocation8], %s1093_s8  ;;  %s1113_s9 = scalar_lea.hbm %s1165_s3, %s592_s24 }
  0x79   : > { %v290_v5 = vpack.c.bf16 %v289_v3, %v289_v3  ;;  %v315_v6 = vsel %vm313_vm1, %v292_v4, 0  ;;  %v372_v22 = vpack.c.bf16 %v371_v19, %v371_v19  ;;  %s444_s20 = sshll.u32 %s286_s7, 4  ;;  %s430_s22 = scalar_lea.sflag [#allocation4], %s1090_s21  ;;  %s1115_s20 = int_to_ptr.vmem [resolvable:$true] %s444_s20 }
  0x7a   : > { %600 = vmatpush3.bf16.msra.mxu0 %v315_v6  ;;  %s784_s28 = scalar_lea.vmem %s1115_s20, 128  ;;  %p1188_p10 = scmp.ne.s32.totalorder %s1176_s25, 0 }
  0x7b   : > { %293 = vxpose.xlu0.c.b16.start.end [1/1] (short) (narrow) %v290_v5, 16  ;;  %p785_p4 = scmp.ne.s32.totalorder %s1115_s20, %s784_s28  ;;  %s877_s15 = smov [#allocation8]  }
  0x7c   : > { %s788_s30 = sshll.u32 %s877_s15, 4  ;;  %s789_s30 = int_to_ptr.vmem [resolvable:$false] %s788_s30 }
  0x7d   : > { %p786_p12 = pnand %p785_p4, %p1188_p10  ;;  %s790_s1 = scalar_lea.vmem %s789_s30, 256 }
  0x7e   : > { %p791_p8 = scmp.lt.s32.totalorder %s1115_s20, %s789_s30  ;;  %p792_p9 = scmp.lt.s32.totalorder %s790_s1, %s784_s28 }
  0x7f   : > { %p787_p1 = pneg %p786_p12 }
  0x80   : > { %p793_p6 = por %p792_p9, %p791_p8 }
  0x82   : > { %p794_p13 = pnand %p793_p6, %p787_p1 }
  0xe1   : > { %v301_v7 = vpop.trf.xlu0 }
  0xe2   : > { %602 = vmatmul.mubr.msk.bf16.vlgmr.msra.gmra.mrb[0].mxu0 %vm309_vm2, %v301_v7 }
 0x1b5   : > { %v351_v8 = vpop.f32.mrb[0].mxu0 }
 0x1b6   : > { %v588_v9 = vmul.f32 -1.442695, %v351_v8  ;;  %v603_v10 = vpop.f32.mrb[1].mxu0 }
 0x1b7   : > { %v354_v11 = vpop.f32.mrb[2].mxu0 }
 0x1b8   : > { %686 = vpow2.f32 %v588_v9  ;;  %v589_v12 = vmul.f32 -1.442695, %v354_v11  ;;  %v604_v13 = vpop.f32.mrb[3].mxu0 }
 0x1ba   : > { %688 = vpow2.f32 %v589_v12 }
 0x1c2   : > { %v687_v14 = vpop.eup %686 }
 0x1c3   : > { %v364_v15 = vadd.f32 1.0, %v687_v14 }
 0x1c4   : > { %v689_v16 = vpop.eup %688 }
 0x1c5   : > { %v365_v17 = vadd.f32 1.0, %v689_v16  ;;  %690 = vrcp.f32 %v364_v15 }
 0x1c7   : > { %692 = vrcp.f32 %v365_v17 }
 0x1cf   : > { %v691_v18 = vpop.eup %690 }
 0x1d1   : > { %v693_v20 = vpop.eup %692 }
 0x1d2   : > { %v370_v21 = vpack.c.bf16 %v693_v20, %v691_v18 }
 0x1d4   : > { %606 = vmatpush3.bf16.msra.mxu1 %v370_v21 }
 0x1d7   : > { %608 = vmatmul.mubr.msk.bf16.vlgmr.msra.gmra.mrb[0].mxu1 %vm373_vm3, %v372_v22 }
 0x2aa   : > { %v411_v23 = vpop.f32.mrb[0].mxu1 }
 0x2ab   : > { %421 = vst.msk [vmem:[%s286_s7] sm:$0xff] %vm373_vm3, %v411_v23  ;;  %v609_v24 = vpop.f32.mrb[1].mxu1 }
 0x2ac   : > { %v414_v25 = vpop.f32.mrb[2].mxu1 }
 0x2ad   : > { %797 = shalt.err (!%p794_p13)
}
 0x2ae   : > { %s798_s29 = scalar_lea.hbm %s1113_s9, 128  ;;  %s802_s21 = scalar_lea.hbm %s1165_s3, 256 }
 0x2af   : > { %p799_p11 = scmp.ne.s32.totalorder %s1113_s9, %s798_s29  ;;  %p803_p7 = scmp.lt.u32.totalorder %s1113_s9, %s1165_s3 }
 0x2b0   : > { %p804_p3 = scmp.lt.u32.totalorder %s802_s21, %s798_s29  ;;  %p806_p4 = scmp.lt.u32.totalorder %s798_s29, %s1113_s9 }
 0x2b1   : > { %p800_p2 = pnand %p799_p11, %p1188_p10 }
 0x2b2   : > { %p805_p0 = por %p804_p3, %p803_p7 }
 0x2b3   : > { %p801_p5 = pneg %p800_p2 }
 0x2b4   : > { %p807_p12 = por %p806_p4, %p805_p0 }
 0x2b6   : > { %p808_p1 = pnand %p807_p12, %p801_p5 }
 0x2b8   : > { %811 = shalt.err (!%p808_p1)
}
 0x2b9   : > { %617 = dma.vmem_to_hbm [thread:$0]  (%p1188_p10), %s1115_s20, 128, %s1113_s9, %s430_s22   ;;  %v610_v26 = vpop.f32.mrb[3].mxu1 }
 0x2ba PF: > { %s456_s16 = sand.u32 1, %s850_s12   ;;  %p1189_p8 = scmp.ne.s32.totalorder %s1178_s27, 0 }
 0x2bb   : > { %p1190_p9 = scmp.ge.s32.totalorder %s870_s17, 2  ;;  %s457_s4 = scalar_lea.sflag [#allocation4], %s456_s16 }
 0x2bd   : > { %p630_p6 = pnand %p1190_p9, %p1189_p8 }
 0x2bf   : > { %845 = dma.done.wait (!%p630_p6), %s457_s4, 128  }
 0x2c0   : > { %847 = vsyncadd (!%p630_p6), %s457_s4, 4294967168  ;;  %s22_s17 = sadd.s32 1, %s870_s17   ;;  %s1191_s25 = sld [smem:[#allocation14_spill]] }
 0x2c1   : > { %p19_p13 = scmp.ge.s32.totalorder %s22_s17, 4   ;;  %s1192_s15 = sld [smem:[#allocation12_spill]] }
 0x2c2   : > { %s1193_s16 = sld [smem:[#allocation13_spill]]  ;;  %s1194_s12 = smov %s854_s13 }
 0x2c3   : > { %s1195_s13 = smov %s858_s14  ;;  %21 = sbr.rel (!%p19_p13) target bundleno = 10 (0xa), region = 109 }
 0x2c6   : > { %s1196_s14 = smov %s1191_s25 }
 0x2ca   :  { %462 = vsyncpa [#allocation3], 1 }
 0x2cb   :  { %464 = vsyncpa [#allocation3 + $0x1], 1 }
 0x2cc   :  { %465 = vsyncpa [#allocation6], 1 }
 0x2cd   :  { %467 = vsyncpa [#allocation6 + $0x1], 1 }
 0x2ce   :  { %468 = vsyncpa [#allocation4], 1 }
 0x2cf   :  { %470 = vsyncpa [#allocation4 + $0x1], 1 }

</bundles_post_ra>
